<compile_context>
chip_gen: v5e
topology: v5e:2x2
jax: 0.10.0
libtpu: 0.0.40
codegen_flags: <defaults>
</compile_context>

<pallas_src>
import jax
import jax.numpy as jnp
from jax.experimental import pallas as pl
from jax.experimental.pallas import tpu as pltpu

_LANE = 128     # vreg lane width
_SUBLANE = 8    # vreg sublane count (f32)


# ---------------------------------------------------------------------------
# Pallas kernel: one (Cin, TILE_HW) column slab of one image.
# ---------------------------------------------------------------------------
def _linear_block_kernel(x_ref, w_ref, s_ref, b_ref, o_ref):
    # x_ref: (Cin, THW)  bf16   activation tile (channels on sublanes, pixels on lanes)
    # w_ref: (Cout, Cin) bf16   1x1 conv weight, resident across the grid
    # s_ref: (Cout, 1)   f32    BN scale = gamma * rsqrt(var + eps)
    # b_ref: (Cout, 1)   f32    BN bias  = beta - mean * scale
    # o_ref: (Cout, THW) bf16
    acc = jnp.dot(w_ref[...], x_ref[...], preferred_element_type=jnp.float32)
    o_ref[...] = (acc * s_ref[...] + b_ref[...]).astype(o_ref.dtype)


# ---------------------------------------------------------------------------
# Tile picking: VMEM-budget + step-count based (not divisor search).
# ---------------------------------------------------------------------------
def _pick_tile_hw(hw, n_batch, cin, cout, vmem_budget_bytes=12 * 1024 * 1024):
    # per-HW-column bytes in flight: x (bf16, 2 bufs) + out (bf16, 2 bufs)
    per_col = 2 * cin * 2 + 2 * cout * 2
    fixed = cout * cin * 2 + 2 * cout * 4          # weight (1 buf) + scale + bias
    budget_cols = max(_LANE, (vmem_budget_bytes - fixed) // per_col)
    max_tile = min(max(_LANE, (budget_cols // _LANE) * _LANE), 2048)

    hw_lanes = pl.cdiv(hw, _LANE) * _LANE
    # aim for >= 8 total grid steps (>= 4 per TensorCore on v7x) when HW allows it
    want_tiles = max(1, pl.cdiv(8, n_batch))
    tile = max(_LANE, (hw_lanes // want_tiles) // _LANE * _LANE)
    return max(_LANE, min(tile, max_tile))


def linear_block_matmul(x_nc_hw, w, scale, bias):
    # x_nc_hw: (N, Cin, HW) bf16;  w: (Cout, Cin) bf16;  scale/bias: (Cout, 1) f32
    n, cin, hw = x_nc_hw.shape
    cout = w.shape[0]
    tile_hw = _pick_tile_hw(hw, n, cin, cout)
    hw_pad = pl.cdiv(hw, tile_hw) * tile_hw
    if hw_pad != hw:
        x_nc_hw = jnp.pad(x_nc_hw, ((0, 0), (0, 0), (0, hw_pad - hw)))

    grid = (n, hw_pad // tile_hw)
    out = pl.pallas_call(
        _linear_block_kernel,
        out_shape=jax.ShapeDtypeStruct((n, cout, hw_pad), jnp.bfloat16),
        grid=grid,
        in_specs=[
            # activation tile: N dim squeezed, Cin full, HW tiled (lane axis)
            pl.BlockSpec((None, cin, tile_hw), lambda i, t: (i, 0, t)),
            # grid-invariant operands: single-buffered
            pl.BlockSpec((cout, cin), lambda i, t: (0, 0),
                         pipeline_mode=pl.Buffered(1)),
            pl.BlockSpec((cout, 1), lambda i, t: (0, 0),
                         pipeline_mode=pl.Buffered(1)),
            pl.BlockSpec((cout, 1), lambda i, t: (0, 0),
                         pipeline_mode=pl.Buffered(1)),
        ],
        out_specs=pl.BlockSpec((None, cout, tile_hw), lambda i, t: (i, 0, t)),
        compiler_params=pltpu.CompilerParams(
            dimension_semantics=("parallel", "parallel"),
            vmem_limit_bytes=32 * 1024 * 1024,
        ),
    )(x_nc_hw, w, scale, bias)

    if hw_pad != hw:
        out = out[:, :, :hw]
    return out


# ---------------------------------------------------------------------------
# Forward wrapper: stays in NCHW the whole way (no transposes).
# ---------------------------------------------------------------------------
def linear_block_forward(x_nchw, params, *, kernel=(1, 1), stride=(1, 1),
                         padding=(0, 0), groups=1):
    # TODO(synk): kernel sizes != (1,1) and groups != 1 are not implemented in the
    # Pallas path; only the module defaults (1x1 conv, groups=1) are covered.
    assert kernel == (1, 1) and groups == 1, "Pallas path implements module defaults."

    n, cin, h, w = x_nchw.shape
    x = x_nchw
    ph, pw = padding
    if ph or pw:
        x = jnp.pad(x, ((0, 0), (0, 0), (ph, ph), (pw, pw)))
    sh, sw = stride
    if sh != 1 or sw != 1:
        x = x[:, :, ::sh, ::sw]                       # 1x1 conv + stride
    _, _, ho, wo = x.shape

    # bf16 activations, (N, Cin, H*W) view — reshape is free, cast is one fused pass
    x2 = x.reshape(n, cin, ho * wo).astype(jnp.bfloat16)

    w2 = params['weight']        # (Cout, Cin) bf16
    scale = params['scale']      # (Cout, 1)   f32
    bias = params['bias']        # (Cout, 1)   f32
    cout = w2.shape[0]

    # pad Cout to a sublane multiple so stores stay unmasked; slice afterwards
    cout_p = pl.cdiv(cout, _SUBLANE) * _SUBLANE
    if cout_p != cout:
        pad = cout_p - cout
        w2 = jnp.pad(w2, ((0, pad), (0, 0)))
        scale = jnp.pad(scale, ((0, pad), (0, 0)))
        bias = jnp.pad(bias, ((0, pad), (0, 0)))

    y = linear_block_matmul(x2, w2, scale, bias)      # (N, Cout_p, H*W) bf16
    if cout_p != cout:
        y = y[:, :cout, :]
    return y.reshape(n, cout, ho, wo)                 # NCHW, bf16


# ---------------------------------------------------------------------------
# Deterministic parameters (Conv2d weight + BatchNorm2d inference-mode stats).
# ---------------------------------------------------------------------------
def make_params(key, in_c, out_c, eps=1e-5):
    k_w, k_g, k_b, k_m, k_v = jax.random.split(key, 5)
    w_oihw = (0.1 * jax.random.normal(k_w, (out_c, in_c, 1, 1))).astype(jnp.float32)
    gamma = (1.0 + 0.1 * jax.random.normal(k_g, (out_c,))).astype(jnp.float32)
    beta = (0.1 * jax.random.normal(k_b, (out_c,))).astype(jnp.float32)
    mean = (0.1 * jax.random.normal(k_m, (out_c,))).astype(jnp.float32)
    var = jax.random.uniform(k_v, (out_c,), minval=0.5, maxval=1.5).astype(jnp.float32)

    scale = gamma * jax.lax.rsqrt(var + eps)          # (out_c,)
    bias = beta - mean * scale                        # (out_c,)
    return {
        'weight': w_oihw[:, :, 0, 0].astype(jnp.bfloat16),   # (Cout, Cin), unscaled bf16
        'scale': scale.reshape(out_c, 1).astype(jnp.float32),
        'bias': bias.reshape(out_c, 1).astype(jnp.float32),
        # unfolded copies for the pure-JAX reference
        'w_oihw': w_oihw, 'gamma': gamma, 'beta': beta,
        'mean': mean, 'var': var, 'eps': eps,
    }


# ---------------------------------------------------------------------------
# Pure-JAX reference (f32 NCHW conv + BN affine, unfolded params).
# ---------------------------------------------------------------------------
def ref_forward(x_nchw, p, *, stride=(1, 1), padding=(0, 0)):
    y = jax.lax.conv_general_dilated(
        x_nchw, p['w_oihw'], stride,
        ((padding[0], padding[0]), (padding[1], padding[1])),
        dimension_numbers=('NCHW', 'OIHW', 'NCHW'))
    s = p['gamma'] * jax.lax.rsqrt(p['var'] + p['eps'])
    b = p['beta'] - p['mean'] * s
    return y * s[None, :, None, None] + b[None, :, None, None]


if __name__ == "__main__":
    # Small, lane-dense demo: H*W = 1024 -> TILE_HW = 256, grid = (2, 4) = 8 steps.
    N, IN_C, OUT_C, H, W = 2, 64, 128, 32, 32
    key = jax.random.PRNGKey(0)
    kx, kp = jax.random.split(key)
    x = jax.random.normal(kx, (N, IN_C, H, W), dtype=jnp.float32)
    params = make_params(kp, IN_C, OUT_C)

    y = jax.block_until_ready(linear_block_forward(x, params))
    y_ref = jax.block_until_ready(ref_forward(x, params))

    assert y.shape == y_ref.shape == (N, OUT_C, H, W)
    # bf16 activations / weights / output vs f32 reference: mixed abs+rel tolerance
    err = jnp.abs(y.astype(jnp.float32) - y_ref)
    tol = 5e-2 + 2e-2 * jnp.abs(y_ref)
    if not bool(jnp.all(err <= tol)):
        raise AssertionError(
            f"Pallas kernel mismatch vs reference: max_err={float(jnp.max(err))}")

    print("KERNEL_OK")
</pallas_src>

<mosaic_0001>
module attributes {stable_mosaic.version = 11 : i64} {
  func.func @_linear_block_kernel(%arg0: i32, %arg1: i32, %arg2: memref<1x64x256xbf16, #tpu.memory_space<vmem>>, %arg3: memref<128x64xbf16, #tpu.memory_space<vmem>>, %arg4: memref<128x1xf32, #tpu.memory_space<vmem>>, %arg5: memref<128x1xf32, #tpu.memory_space<vmem>>, %arg6: memref<1x128x256xbf16, #tpu.memory_space<vmem>>) attributes {dimension_semantics = [#tpu.dimension_semantics<parallel>, #tpu.dimension_semantics<parallel>], iteration_bounds = array<i64: 2, 4>, scalar_prefetch = 0 : i64, scratch_operands = 0 : i64, tpu.core_type = #tpu.core_type<tc>, window_params = [{transform_indices = @transform_0, window_bounds = array<i64: 1, 64, 256>}, {pipeline_mode = #tpu.pipeline_mode<synchronous>, transform_indices = @transform_1, window_bounds = array<i64: 128, 64>}, {pipeline_mode = #tpu.pipeline_mode<synchronous>, transform_indices = @transform_2, window_bounds = array<i64: 128, 1>}, {pipeline_mode = #tpu.pipeline_mode<synchronous>, transform_indices = @transform_3, window_bounds = array<i64: 128, 1>}, {transform_indices = @transform_4, window_bounds = array<i64: 1, 128, 256>}]} {
    %c0 = arith.constant 0 : index
    %c0_0 = arith.constant 0 : index
    %0 = vector.load %arg3[%c0, %c0_0] : memref<128x64xbf16, #tpu.memory_space<vmem>>, vector<128x64xbf16>
    %c0_1 = arith.constant 0 : index
    %c0_2 = arith.constant 0 : index
    %c0_3 = arith.constant 0 : index
    %1 = vector.load %arg2[%c0_1, %c0_2, %c0_3] : memref<1x64x256xbf16, #tpu.memory_space<vmem>>, vector<1x64x256xbf16>
    %2 = vector.shape_cast %1 : vector<1x64x256xbf16> to vector<64x256xbf16>
    %cst = arith.constant dense<0.000000e+00> : vector<128x256xf32>
    %3 = tpu.matmul %0, %2, %cst {dimension_numbers = #tpu.dot_dimension_numbers<[1], [0], [0], [1], [0, 0, 1, 1], [], []>} : vector<128x64xbf16>, vector<64x256xbf16>, vector<128x256xf32> -> vector<128x256xf32>
    %c0_4 = arith.constant 0 : index
    %c0_5 = arith.constant 0 : index
    %4 = vector.load %arg4[%c0_4, %c0_5] : memref<128x1xf32, #tpu.memory_space<vmem>>, vector<128x1xf32>
    %5 = vector.broadcast %4 : vector<128x1xf32> to vector<128x256xf32>
    %6 = arith.mulf %3, %5 : vector<128x256xf32>
    %c0_6 = arith.constant 0 : index
    %c0_7 = arith.constant 0 : index
    %7 = vector.load %arg5[%c0_6, %c0_7] : memref<128x1xf32, #tpu.memory_space<vmem>>, vector<128x1xf32>
    %8 = vector.broadcast %7 : vector<128x1xf32> to vector<128x256xf32>
    %9 = arith.addf %6, %8 : vector<128x256xf32>
    %10 = arith.truncf %9 : vector<128x256xf32> to vector<128x256xbf16>
    %c0_8 = arith.constant 0 : index
    %c0_9 = arith.constant 0 : index
    %c0_10 = arith.constant 0 : index
    %11 = vector.load %arg6[%c0_8, %c0_9, %c0_10] : memref<1x128x256xbf16, #tpu.memory_space<vmem>>, vector<1x128x256xbf16>
    %12 = vector.shape_cast %11 : vector<1x128x256xbf16> to vector<128x256xbf16>
    %13 = vector.shape_cast %10 : vector<128x256xbf16> to vector<1x128x256xbf16>
    tpu.vector_store %arg6[%c0_8, %c0_9, %c0_10], %13 {strides = array<i32>} : memref<1x128x256xbf16, #tpu.memory_space<vmem>>, vector<1x128x256xbf16>,
    return
  }
  func.func @transform_0(%arg0: i32, %arg1: i32) -> (i32, i32, i32) {
    %c0_i32 = arith.constant 0 : i32
    %c0_i32_0 = arith.constant 0 : i32
    return %arg0, %c0_i32, %arg1 : i32, i32, i32
  }
  func.func @transform_1(%arg0: i32, %arg1: i32) -> (i32, i32) {
    %c0_i32 = arith.constant 0 : i32
    %c0_i32_0 = arith.constant 0 : i32
    %c0_i32_1 = arith.constant 0 : i32
    return %c0_i32, %c0_i32_0 : i32, i32
  }
  func.func @transform_2(%arg0: i32, %arg1: i32) -> (i32, i32) {
    %c0_i32 = arith.constant 0 : i32
    %c0_i32_0 = arith.constant 0 : i32
    %c0_i32_1 = arith.constant 0 : i32
    return %c0_i32, %c0_i32_0 : i32, i32
  }
  func.func @transform_3(%arg0: i32, %arg1: i32) -> (i32, i32) {
    %c0_i32 = arith.constant 0 : i32
    %c0_i32_0 = arith.constant 0 : i32
    %c0_i32_1 = arith.constant 0 : i32
    return %c0_i32, %c0_i32_0 : i32, i32
  }
  func.func @transform_4(%arg0: i32, %arg1: i32) -> (i32, i32, i32) {
    %c0_i32 = arith.constant 0 : i32
    %c0_i32_0 = arith.constant 0 : i32
    return %arg0, %c0_i32, %arg1 : i32, i32, i32
  }
}

</mosaic_0001>

<bundles_post_ra>
// kernel: tpu_custom_call.1
= control target key start
LH: loop header
LB: loop body
LE: loop exit
PB: predicated region body
PF: predicated region fallthrough
CT: control target
= control target key end

     0   :  { %9 = vsyncpa [#allocation3], 0  ;;  %s1605_s0 = inlined_call_operand.hbm [shape: bf16[2,64,1024], index: 0, kind: input, shape index: {}]   ;;  %s1606_s1 = inlined_call_operand.vmem [shape: bf16[128,64], index: 1, kind: input, shape index: {}]   ;;  %s1607_s2 = inlined_call_operand.vmem [shape: f32[128,1], index: 2, kind: input, shape index: {}]   ;;  %s1608_s3 = inlined_call_operand.vmem [shape: f32[128,1], index: 3, kind: input, shape index: {}]   ;;  %s1609_s4 = inlined_call_operand.hbm [shape: bf16[2,128,1024], index: 4, kind: output, shape index: {}]  }
   0x1   :  { %11 = vsyncpa [#allocation3 + $0x1], 0 }
   0x2   :  { %12 = vsyncpa [#allocation4], 0 }
   0x3   :  { %14 = vsyncpa [#allocation4 + $0x1], 0  ;;  %s1233_s15 = smov 0   ;;  %s1235_s16 = smov 0  }
   0x4   :  { %s1237_s17 = smov 0   ;;  %s1239_s18 = smov 0  }
   0x5   :  { %s1241_s19 = smov 0   ;;  %s1243_s20 = smov 0  }
   0x6   :  { %s1245_s21 = smov 0   ;;  %s1247_s22 = smov 0  }
   0x7 LB: > { %1614 = sst [smem:[#allocation8_spill]] %s1179_s17  ;;  %s862_s23 = sadd.s32 4294967295, %s1199_s22   ;;  %s1199_s22 = sphi %s1247_s22, %s20_s22   ;;  %s1195_s21 = sphi %s1245_s21, %s1633_s21   ;;  %s1191_s20 = sphi %s1243_s20, %s1626_s20   ;;  %s1187_s19 = sphi %s1241_s19, %s1632_s19   ;;  %s1183_s18 = sphi %s1239_s18, %s1631_s18   ;;  %s1179_s17 = sphi %s1237_s17, %s1630_s17   ;;  %s1175_s16 = sphi %s1235_s16, %s1629_s16   ;;  %s1171_s15 = sphi %s1233_s15, %s1628_s15  }
   0x8   : > { %1615 = sst [smem:[#allocation9_spill]] %s1191_s20  ;;  %s863_s24 = sadd.s32 4294967294, %s1199_s22  }
   0x9   : > { %s29_s25 = sadd.s32 1, %s1191_s20  ;;  %s32_s26 = sadd.s32 1, %s1195_s21 }
   0xa   : > { %p30_p0 = scmp.ge.s32.totalorder %s29_s25, 4  ;;  %s41_s27 = sadd.s32 1, %s1179_s17 }
   0xb   : > { %p48_p1 = scmp.ne.s32.totalorder %s1179_s17, %s1175_s16  ;;  %p49_p2 = scmp.eq.s32.totalorder %s1199_s22, 0 }
   0xc   : > { %s1635_s25 = smov (%p30_p0, %s29_s25), 0  ;;  %s1637_s26 = smov (!%p30_p0, %s32_s26), %s1195_s21 }
   0xd   : > { %1616 = sst [smem:[#allocation10_spill]] %s1635_s25  ;;  %s37_s28 = ssub.s32 %s1191_s20, %s1635_s25 }
   0xe   : > { %p1286_p3 = por %p49_p2, %p48_p1  ;;  %p34_p4 = scmp.ge.s32.totalorder %s1637_s26, 2 }
   0xf   : > { %p54_p5 = scmp.ne.s32.totalorder %s1175_s16, %s1171_s15  ;;  %p55_p6 = scmp.eq.s32.totalorder %s862_s23, 0 }
  0x10   : > { %p143_p7 = scmp.eq.s32.totalorder %s862_s23, 7  ;;  %s1639_s26 = smov (%p34_p4, %s1637_s26), 0 }
  0x11   : > { %1618 = sst [smem:[#allocation11_spill]] %s1639_s26  ;;  %p1294_p8 = por %p55_p6, %p54_p5 }
  0x12   : > { %p1298_p9 = por %p143_p7, %p48_p1  ;;  %s36_s6 = ssub.s32 %s1195_s21, %s1639_s26 }
  0x13   : > { %p149_p10 = scmp.eq.s32.totalorder %s863_s24, 7  ;;  %s38_s7 = sor.u32 %s37_s28, %s36_s6 }
  0x14   : > { %p39_p11 = scmp.eq.s32.totalorder %s38_s7, 0  ;;  %p995_p13 = scmp.lt.s32.totalorder %s1199_s22, 8 }
  0x15   : > { %p1304_p12 = por %p149_p10, %p54_p5  ;;  %s178_s9 = sand.u32 1, %s1179_s17  }
  0x16   : > { %s1311_s10 = scalar_select %p39_p11, %s1179_s17, %s41_s27  }
  0x17   : > { %s866_s11 = sshll.u32 %s178_s9, 6  ;;  %s867_s12 = sshll.u32 %s1191_s20, 1 }
  0x18   : > { %1622 = sst [smem:[#allocation12_spill]] %s1311_s10  ;;  %s868_s13 = sshll.u32 %s1195_s21, 6 }
  0x19   : > { %s182_s14 = scalar_lea.vmem [#allocation2], %s866_s11  ;;  %s187_s26 = sadd.s32 %s868_s13, %s867_s12 }
  0x1a   : > { %s192_s23 = sshll.u32 %s182_s14, 4  ;;  %s869_s24 = sshll.u32 %s187_s26, 2  ;;  %s193_s23 = int_to_ptr.vmem [resolvable:$true] %s192_s23 }
  0x1b   : > { %p988_p0 = pnand %p995_p13, %p1286_p3  ;;  %s189_s7 = scalar_lea.hbm %s1605_s0, %s869_s24 }
  0x1c   : > { %s190_s25 = sshll.u32 %s189_s7, 4  ;;  %p870_p1 = scmp.ge.s32.totalorder %s1199_s22, 1  ;;  %s191_s25 = int_to_ptr.hbm [resolvable:$true] %s190_s25 }
  0x1d   : > { %s179_s27 = scalar_lea.sflag [#allocation3], %s178_s9  ;;  %s1201_s10 = smov 512  }
  0x1e   : > { %s1202_s17 = smov 128   ;;  %s1203_s20 = smov 8  }
  0x1f   : > { %990 = dma.hbm_to_vmem [thread:$0]  (!%p988_p0), %s191_s25, 1024, %s193_s23, %s179_s27, %s1201_s10, %s1202_s17, %s1203_s20  }
  0x20   : > { %p200_p2 = scmp.lt.s32.totalorder %s1199_s22, 9 }
  0x22   : > { %p201_p4 = pnand %p870_p1, %p200_p2 }
  0x23   : > { %s1323_s26 = sand.u32 (!%p201_p4), 1, %s1175_s16  }
  0x24   : > { %204 = sbr.rel (%p201_p4) target bundleno = 262 (0x106), region = 36  ;;  %s871_s29 = sshll.u32 (!%p201_p4), %s1323_s26, 6 }
  0x25   : > { %s207_s11 = scalar_lea.sflag (!%p201_p4), [#allocation3], %s1323_s26  ;;  %s1327_s12 = scalar_lea.vmem (!%p201_p4), [#allocation2], %s871_s29 }
  0x29   : > { %1162 = dma.done.wait (%p1294_p8), %s207_s11, 1024  }
  0x2a   : > { %1164 = vsyncadd (%p1294_p8), %s207_s11, 4294966272  ;;  %v1204_v0 = vmov 0   ;;  %v470_v1 = vld [vmem:[%s1607_s2 + $0x20] sm:$0xff]  ;;  %v468_v2 = vld [vmem:[%s1607_s2 + $0x10] sm:$0xff]  ;;  %vm343_vm0 = vcmask 523264   ;;  %s872_s7 = sshll.u32 %s1323_s26, 7 }
  0x2b   : > { %1070 = vset.pattern.permute.xlu2 %v1204_v0  ;;  %1069 = vset.pattern.permute.xlu1 %v1204_v0  ;;  %v466_v3 = vld [vmem:[%s1607_s2] sm:$0xff]  ;;  %v931_v4 = vld [vmem:[%s1327_s12 + $0x30] sm:$0xf]  ;;  %v974_v5 = vld [vmem:[%s1327_s12 + $0x34] sm:$0xf0]  ;;  %s1512_s27 = scalar_lea.vmem [#allocation5], %s872_s7 }
  0x2c   : > { %1068 = vset.pattern.permute.xlu0 %v1204_v0  ;;  %504 = vperm.xlu2 %1070, %v470_v1   ;;  %v973_v6 = vld [vmem:[%s1327_s12 + $0x34] sm:$0xf]  ;;  %v932_v7 = vor.u32 %v974_v5, %v931_v4  ;;  %v933_v8 = vld [vmem:[%s1327_s12 + $0x38] sm:$0xf0]  ;;  %v923_v9 = vld [vmem:[%s1327_s12 + $0x20] sm:$0xf] }
  0x2d   : > { %494 = vperm.xlu1 %1069, %v468_v2   ;;  %484 = vperm.xlu0 %1068, %v466_v3   ;;  %v972_v10 = vld [vmem:[%s1327_s12 + $0x24] sm:$0xf0]  ;;  %v936_v11 = vor.u32 %v973_v6, %v933_v8  ;;  %v971_v12 = vld [vmem:[%s1327_s12 + $0x24] sm:$0xf]  ;;  %v925_v13 = vld [vmem:[%s1327_s12 + $0x28] sm:$0xf0] }
  0x2e   : > { %372 = vmatpush.bf16.msra.mxu0 %v932_v7  ;;  %975 = vmatpush.bf16.msra.mxu2 %v932_v7  ;;  %v924_v14 = vor.u32 %v972_v10, %v923_v9  ;;  %v928_v15 = vor.u32 %v971_v12, %v925_v13  ;;  %v915_v16 = vld [vmem:[%s1327_s12 + $0x10] sm:$0xf]  ;;  %v970_v17 = vld [vmem:[%s1327_s12 + $0x14] sm:$0xf0]  ;;  %v969_v18 = vld [vmem:[%s1327_s12 + $0x14] sm:$0xf] }
  0x2f   : > { %421 = vmatpush.bf16.msra.mxu1 %v936_v11  ;;  %979 = vmatpush.bf16.msra.mxu3 %v936_v11  ;;  %v917_v19 = vld [vmem:[%s1327_s12 + $0x18] sm:$0xf0]  ;;  %v471_v20 = vld [vmem:[%s1607_s2 + $0x28] sm:$0xff]  ;;  %v916_v23 = vor.u32 %v970_v17, %v915_v16  ;;  %v907_v25 = vld [vmem:[%s1327_s12] sm:$0xf]  ;;  %s954_s29 = sshll.u32 %s1183_s18, 1 }
  0x30   : > { %v469_v21 = vld [vmem:[%s1607_s2 + $0x18] sm:$0xff]  ;;  %v467_v22 = vld [vmem:[%s1607_s2 + $0x8] sm:$0xff]  ;;  %v920_v24 = vor.u32 %v969_v18, %v917_v19  ;;  %v967_v27 = vld [vmem:[%s1327_s12 + $0x4] sm:$0xf]  ;;  %s955_s11 = sshll.u32 %s1187_s19, 7  ;;  %s769_s25 = sshll.u32 %s1512_s27, 4  ;;  %s770_s25 = int_to_ptr.vmem [resolvable:$true] %s769_s25 }
  0x31   : > { %v968_v26 = vld [vmem:[%s1327_s12 + $0x4] sm:$0xf0]  ;;  %v909_v28 = vld [vmem:[%s1327_s12 + $0x8] sm:$0xf0]  ;;  %v474_v31 = vld [vmem:[%s1607_s2 + $0x40] sm:$0xff]  ;;  %s766_s17 = sadd.s32 %s955_s11, %s954_s29  ;;  %s755_s30 = scalar_lea.sflag [#allocation4], %s1323_s26 }
  0x32   : > { %373 = vmatpush.bf16.msra.mxu0 %v924_v14  ;;  %976 = vmatpush.bf16.msra.mxu2 %v924_v14  ;;  %v908_v29 = vor.u32 %v968_v26, %v907_v25  ;;  %v912_v30 = vor.u32 %v967_v27, %v909_v28  ;;  %v473_v32 = vld [vmem:[%s1607_s2 + $0x38] sm:$0xff]  ;;  %v959_v33 = vld [vmem:[%s1606_s1] sm:$0xff]  ;;  %v472_v34 = vld [vmem:[%s1607_s2 + $0x30] sm:$0xff]  ;;  %s956_s18 = sshll.u32 %s766_s17, 2  ;;  %s1121_s24 = scalar_lea.hbm %s1609_s4, 1024 }
  0x33   : > { %422 = vmatpush.bf16.msra.mxu1 %v928_v15  ;;  %980 = vmatpush.bf16.msra.mxu3 %v928_v15  ;;  %v963_v35 = vld [vmem:[%s1606_s1 + $0x20] sm:$0xff]  ;;  %v477_v36 = vld [vmem:[%s1607_s2 + $0x58] sm:$0xff]  ;;  %v476_v37 = vld [vmem:[%s1607_s2 + $0x50] sm:$0xff]  ;;  %s768_s12 = scalar_lea.hbm %s1609_s4, %s956_s18 }
  0x34   : > { %509 = vperm.xlu2 %1070, %v471_v20   ;;  %v475_v38 = vld [vmem:[%s1607_s2 + $0x48] sm:$0xff]  ;;  %v480_v39 = vld [vmem:[%s1607_s2 + $0x70] sm:$0xff]  ;;  %v478_v42 = vld [vmem:[%s1607_s2 + $0x60] sm:$0xff]  ;;  %s771_s9 = sshll.u32 %s768_s12, 4  ;;  %s772_s9 = int_to_ptr.hbm [resolvable:$true] %s771_s9 }
  0x35   : > { %499 = vperm.xlu1 %1069, %v469_v21   ;;  %489 = vperm.xlu0 %1068, %v467_v22   ;;  %v479_v40 = vld [vmem:[%s1607_s2 + $0x68] sm:$0xff]  ;;  %v594_v45 = vld [vmem:[%s1608_s3] sm:$0xff]  ;;  %v481_v46 = vld [vmem:[%s1607_s2 + $0x78] sm:$0xff]  ;;  %s1115_s10 = sshra.s32 %s772_s9, 4  ;;  %s1116_s10 = int_to_ptr.hbm [resolvable:$true] %s1115_s10 }
  0x36   : > { %374 = vmatpush.bf16.msra.mxu0 %v916_v23  ;;  %977 = vmatpush.bf16.msra.mxu2 %v916_v23  ;;  %v960_v41 = vld [vmem:[%s1606_s1 + $0x8] sm:$0xff]  ;;  %v598_v47 = vld [vmem:[%s1608_s3 + $0x20] sm:$0xff]  ;;  %v597_v48 = vld [vmem:[%s1608_s3 + $0x18] sm:$0xff]  ;;  %s1117_s13 = scalar_lea.hbm %s1116_s10, 128  ;;  %p1122_p7 = scmp.lt.s32.totalorder %s1116_s10, %s1609_s4 }
  0x37   : > { %423 = vmatpush.bf16.msra.mxu1 %v920_v24  ;;  %981 = vmatpush.bf16.msra.mxu3 %v920_v24  ;;  %v964_v43 = vld [vmem:[%s1606_s1 + $0x28] sm:$0xff]  ;;  %v961_v49 = vld [vmem:[%s1606_s1 + $0x10] sm:$0xff]  ;;  %v601_v52 = vld [vmem:[%s1608_s3 + $0x38] sm:$0xff]  ;;  %p1118_p3 = scmp.ne.s32.totalorder %s1116_s10, %s1117_s13  ;;  %p1123_p8 = scmp.lt.s32.totalorder %s1121_s24, %s1117_s13 }
  0x38   : > { %v595_v44 = vld [vmem:[%s1608_s3 + $0x8] sm:$0xff]  ;;  %v596_v50 = vld [vmem:[%s1608_s3 + $0x10] sm:$0xff]  ;;  %v962_v57 = vld [vmem:[%s1606_s1 + $0x18] sm:$0xff] }
  0x39   : > { %v965_v51 = vld [vmem:[%s1606_s1 + $0x30] sm:$0xff]  ;;  %v599_v54 = vld [vmem:[%s1608_s3 + $0x28] sm:$0xff]  ;;  %v602_v58 = vld [vmem:[%s1608_s3 + $0x40] sm:$0xff]  ;;  %p1119_p5 = pnand %p1118_p3, %p1298_p9  ;;  %p1124_p10 = por %p1123_p8, %p1122_p7 }
  0x3a   : > { %375 = vmatpush.bf16.msra.mxu0 %v908_v29  ;;  %978 = vmatpush.bf16.msra.mxu2 %v908_v29  ;;  %v600_v53 = vld [vmem:[%s1608_s3 + $0x30] sm:$0xff]  ;;  %v603_v56 = vld [vmem:[%s1608_s3 + $0x48] sm:$0xff]  ;;  %v966_v59 = vld [vmem:[%s1606_s1 + $0x38] sm:$0xff] }
  0x3b   : > { %424 = vmatpush.bf16.msra.mxu1 %v912_v30  ;;  %982 = vmatpush.bf16.msra.mxu3 %v912_v30  ;;  %v604_v55 = vld [vmem:[%s1608_s3 + $0x50] sm:$0xff]  ;;  %v607_v60 = vld [vmem:[%s1608_s3 + $0x68] sm:$0xff]  ;;  %v606_v61 = vld [vmem:[%s1608_s3 + $0x60] sm:$0xff]  ;;  %p1120_p6 = pneg %p1119_p5 }
  0x3c   : > { %524 = vperm.xlu2 %1070, %v474_v31   ;;  %v605_v62 = vld [vmem:[%s1608_s3 + $0x58] sm:$0xff]  ;;  %v608_v0 = vld [vmem:[%s1608_s3 + $0x70] sm:$0xff] }
  0x3d   : > { %519 = vperm.xlu1 %1069, %v473_v32   ;;  %514 = vperm.xlu0 %1068, %v472_v34   ;;  %v609_v63 = vld [vmem:[%s1608_s3 + $0x78] sm:$0xff]  ;;  %p1125_p11 = pnand %p1124_p10, %p1120_p6 }
  0x3e   : > { %937 = vmatmul.msk.bf16.vlgmr.msra.gmra.mxu0 %vm343_vm0, %v959_v33  ;;  %941 = vmatmul.msk.bf16.vlgmr.msra.gmra.mxu2 %vm343_vm0, %v963_v35 }
  0x3f   : > { %945 = vmatmul.msk.bf16.vlgmr.msra.gmra.mxu1 %vm343_vm0, %v959_v33  ;;  %949 = vmatmul.msk.bf16.vlgmr.msra.gmra.mxu3 %vm343_vm0, %v963_v35 }
  0x44   : > { %539 = vperm.xlu2 %1070, %v477_v36  }
  0x45   : > { %534 = vperm.xlu1 %1069, %v476_v37   ;;  %529 = vperm.xlu0 %1068, %v475_v38  }
  0x4c   : > { %554 = vperm.xlu2 %1070, %v480_v39  }
  0x4d   : > { %549 = vperm.xlu1 %1069, %v479_v40   ;;  %544 = vperm.xlu0 %1068, %v478_v42  }
  0x4e   : > { %938 = vmatmul.msk.bf16.gmra.mxu0 %vm343_vm0, %v960_v41  ;;  %942 = vmatmul.msk.bf16.gmra.mxu2 %vm343_vm0, %v964_v43 }
  0x4f   : > { %946 = vmatmul.msk.bf16.gmra.mxu1 %vm343_vm0, %v960_v41  ;;  %950 = vmatmul.msk.bf16.gmra.mxu3 %vm343_vm0, %v964_v43 }
  0x54   : > { %617 = vperm.xlu2 %1070, %v595_v44  }
  0x55   : > { %612 = vperm.xlu1 %1069, %v594_v45   ;;  %559 = vperm.xlu0 %1068, %v481_v46  }
  0x5c   : > { %632 = vperm.xlu2 %1070, %v598_v47  }
  0x5d   : > { %627 = vperm.xlu1 %1069, %v597_v48   ;;  %622 = vperm.xlu0 %1068, %v596_v50  }
  0x5e   : > { %939 = vmatmul.msk.bf16.gmra.mxu0 %vm343_vm0, %v961_v49  ;;  %943 = vmatmul.msk.bf16.gmra.mxu2 %vm343_vm0, %v965_v51 }
  0x5f   : > { %947 = vmatmul.msk.bf16.gmra.mxu1 %vm343_vm0, %v961_v49  ;;  %951 = vmatmul.msk.bf16.gmra.mxu3 %vm343_vm0, %v965_v51 }
  0x64   : > { %647 = vperm.xlu2 %1070, %v601_v52  }
  0x65   : > { %642 = vperm.xlu1 %1069, %v600_v53   ;;  %637 = vperm.xlu0 %1068, %v599_v54  }
  0x6c   : > { %662 = vperm.xlu2 %1070, %v604_v55  }
  0x6d   : > { %657 = vperm.xlu1 %1069, %v603_v56   ;;  %652 = vperm.xlu0 %1068, %v602_v58  }
  0x6e   : > { %940 = vmatmul.msk.bf16.gmra.mxu0 %vm343_vm0, %v962_v57  ;;  %944 = vmatmul.msk.bf16.gmra.mxu2 %vm343_vm0, %v966_v59 }
  0x6f   : > { %948 = vmatmul.msk.bf16.gmra.mxu1 %vm343_vm0, %v962_v57  ;;  %952 = vmatmul.msk.bf16.gmra.mxu3 %vm343_vm0, %v966_v59 }
  0x74   : > { %677 = vperm.xlu2 %1070, %v607_v60  }
  0x75   : > { %672 = vperm.xlu1 %1069, %v606_v61   ;;  %667 = vperm.xlu0 %1068, %v605_v62  }
  0x7d   : > { %687 = vperm.xlu1 %1069, %v609_v63   ;;  %682 = vperm.xlu0 %1068, %v608_v0  }
  0x86   : > { %v1485_v1 = vpop.permute.xlu2 %504 }
  0x8e   : > { %v1487_v2 = vpop.permute.xlu2 %509 }
  0x96   : > { %v1489_v3 = vpop.permute.xlu2 %524 }
  0x9e   : > { %v1491_v6 = vpop.permute.xlu2 %539 }
  0x9f   : > { %v495_v4 = vpop.permute.xlu1 %494  ;;  %v485_v5 = vpop.permute.xlu0 %484 }
  0xa6   : > { %v1493_v9 = vpop.permute.xlu2 %554 }
  0xa7   : > { %v500_v7 = vpop.permute.xlu1 %499  ;;  %v490_v8 = vpop.permute.xlu0 %489 }
  0xae   : > { %v618_v12 = vpop.permute.xlu2 %617 }
  0xaf   : > { %v1495_v10 = vpop.permute.xlu1 %519  ;;  %v1497_v11 = vpop.permute.xlu0 %514 }
  0xb6   : > { %v1503_v18 = vpop.permute.xlu2 %632 }
  0xb7   : > { %v535_v13 = vpop.permute.xlu1 %534  ;;  %v1499_v14 = vpop.permute.xlu0 %529 }
  0xbb   : > { %v377_v15 = vpop.f32.mrf.mxu0 }
  0xbc   : > { %v426_v16 = vpop.f32.mrf.mxu1  ;;  %v562_v26 = vmul.f32 %v485_v5, %v377_v15 }
  0xbd   : > { %v563_v27 = vmul.f32 %v485_v5, %v426_v16 }
  0xbe   : > { %v1510_v35 = vpop.permute.xlu2 %647 }
  0xbf   : > { %v1501_v17 = vpop.permute.xlu1 %549  ;;  %v1505_v19 = vpop.permute.xlu0 %544 }
  0xc1   : > { %v397_v20 = vpop.f32.mrf.mxu2 }
  0xc2   : > { %v446_v21 = vpop.f32.mrf.mxu3 }
  0xc3   : > { %v379_v22 = vpop.f32.mrf.mxu0 }
  0xc4   : > { %v564_v23 = vmul.f32 %v490_v8, %v379_v22  ;;  %v428_v24 = vpop.f32.mrf.mxu1 }
  0xc5   : > { %v565_v25 = vmul.f32 %v490_v8, %v428_v24  ;;  %v579_v24 = vmul.f32 %v1489_v3, %v446_v21 }
  0xc6   : > { %v692_v28 = vadd.f32 %v618_v12, %v564_v23  ;;  %v663_v52 = vpop.permute.xlu2 %662  ;;  %v578_v23 = vmul.f32 %v1489_v3, %v397_v20 }
  0xc7   : > { %v693_v29 = vadd.f32 %v618_v12, %v565_v25  ;;  %v613_v30 = vpop.permute.xlu1 %612  ;;  %v1508_v33 = vpop.permute.xlu0 %559 }
  0xc8   : > { %v690_v31 = vadd.f32 %v613_v30, %v562_v26  ;;  %v691_v32 = vadd.f32 %v613_v30, %v563_v27 }
  0xc9   : > { %v723_v34 = vpack.c.bf16 %v693_v29, %v692_v28  ;;  %v399_v37 = vpop.f32.mrf.mxu2 }
  0xca   : > { %v722_v36 = vpack.c.bf16 %v691_v32, %v690_v31  ;;  %v448_v38 = vpop.f32.mrf.mxu3 }
  0xcb   : > { %739 = vst [vmem:[%s1512_s27 + $0x8] sm:$0xff] %v723_v34  ;;  %v382_v39 = vpop.f32.mrf.mxu0  ;;  %v581_v16 = vmul.f32 %v1499_v14, %v448_v38 }
  0xcc   : > { %738 = vst [vmem:[%s1512_s27] sm:$0xff] %v722_v36  ;;  %v431_v40 = vpop.f32.mrf.mxu1  ;;  %v566_v41 = vmul.f32 %v495_v4, %v382_v39 }
  0xcd   : > { %v567_v42 = vmul.f32 %v495_v4, %v431_v40 }
  0xcf   : > { %v628_v43 = vpop.permute.xlu1 %627  ;;  %v623_v44 = vpop.permute.xlu0 %622 }
  0xd0   : > { %v694_v45 = vadd.f32 %v623_v44, %v566_v41  ;;  %v695_v46 = vadd.f32 %v623_v44, %v567_v42 }
  0xd1   : > { %v402_v47 = vpop.f32.mrf.mxu2 }
  0xd2   : > { %v724_v48 = vpack.c.bf16 %v695_v46, %v694_v45  ;;  %v582_v49 = vmul.f32 %v535_v13, %v402_v47  ;;  %v451_v50 = vpop.f32.mrf.mxu3 }
  0xd3   : > { %v384_v51 = vpop.f32.mrf.mxu0  ;;  %v583_v53 = vmul.f32 %v535_v13, %v451_v50 }
  0xd4   : > { %v568_v54 = vmul.f32 %v500_v7, %v384_v51  ;;  %v433_v55 = vpop.f32.mrf.mxu1  ;;  %740 = vst [vmem:[%s1512_s27 + $0x10] sm:$0xff] %v724_v48  ;;  %v710_v56 = vadd.f32 %v663_v52, %v582_v49 }
  0xd5   : > { %v569_v57 = vmul.f32 %v500_v7, %v433_v55  ;;  %v711_v58 = vadd.f32 %v663_v52, %v583_v53  ;;  %v580_v7 = vmul.f32 %v1499_v14, %v399_v37  ;;  %v678_v53 = vpop.permute.xlu2 %677 }
  0xd6   : > { %v696_v59 = vadd.f32 %v628_v43, %v568_v54 }
  0xd7   : > { %v697_v60 = vadd.f32 %v628_v43, %v569_v57  ;;  %v1517_v61 = vpop.permute.xlu1 %642  ;;  %v732_v62 = vpack.c.bf16 %v711_v58, %v710_v56  ;;  %v638_v63 = vpop.permute.xlu0 %637 }
  0xd9   : > { %v725_v0 = vpack.c.bf16 %v697_v60, %v696_v59  ;;  %748 = vst [vmem:[%s1512_s27 + $0x50] sm:$0xff] %v732_v62  ;;  %v404_v4 = vpop.f32.mrf.mxu2 }
  0xda   : > { %v453_v5 = vpop.f32.mrf.mxu3  ;;  %v584_v40 = vmul.f32 %v1491_v6, %v404_v4 }
  0xdb   : > { %741 = vst [vmem:[%s1512_s27 + $0x18] sm:$0xff] %v725_v0  ;;  %v387_v8 = vpop.f32.mrf.mxu0  ;;  %v585_v41 = vmul.f32 %v1491_v6, %v453_v5 }
  0xdc   : > { %v570_v12 = vmul.f32 %v1485_v1, %v387_v8  ;;  %v436_v13 = vpop.f32.mrf.mxu1 }
  0xdd   : > { %v571_v15 = vmul.f32 %v1485_v1, %v436_v13 }
  0xde   : > { %v698_v22 = vadd.f32 %v1503_v18, %v570_v12 }
  0xdf   : > { %v699_v25 = vadd.f32 %v1503_v18, %v571_v15  ;;  %v658_v26 = vpop.permute.xlu1 %657  ;;  %v653_v29 = vpop.permute.xlu0 %652 }
  0xe0   : > { %v708_v27 = vadd.f32 %v658_v26, %v580_v7  ;;  %v709_v28 = vadd.f32 %v658_v26, %v581_v16  ;;  %v706_v30 = vadd.f32 %v653_v29, %v578_v23  ;;  %v707_v31 = vadd.f32 %v653_v29, %v579_v24 }
  0xe1   : > { %v726_v1 = vpack.c.bf16 %v699_v25, %v698_v22  ;;  %v407_v34 = vpop.f32.mrf.mxu2 }
  0xe2   : > { %v731_v32 = vpack.c.bf16 %v709_v28, %v708_v27  ;;  %v730_v14 = vpack.c.bf16 %v707_v31, %v706_v30  ;;  %v456_v36 = vpop.f32.mrf.mxu3  ;;  %v586_v21 = vmul.f32 %v1505_v19, %v407_v34 }
  0xe3   : > { %742 = vst [vmem:[%s1512_s27 + $0x20] sm:$0xff] %v726_v1  ;;  %v389_v37 = vpop.f32.mrf.mxu0  ;;  %v587_v38 = vmul.f32 %v1505_v19, %v456_v36 }
  0xe4   : > { %747 = vst [vmem:[%s1512_s27 + $0x48] sm:$0xff] %v731_v32  ;;  %v572_v20 = vmul.f32 %v1487_v2, %v389_v37  ;;  %v438_v3 = vpop.f32.mrf.mxu1 }
  0xe5   : > { %746 = vst [vmem:[%s1512_s27 + $0x40] sm:$0xff] %v730_v14  ;;  %v573_v18 = vmul.f32 %v1487_v2, %v438_v3 }
  0xe6   : > { %v700_v39 = vadd.f32 %v638_v63, %v572_v20 }
  0xe7   : > { %v701_v42 = vadd.f32 %v638_v63, %v573_v18  ;;  %v673_v43 = vpop.permute.xlu1 %672  ;;  %v668_v46 = vpop.permute.xlu0 %667 }
  0xe8   : > { %v714_v44 = vadd.f32 %v673_v43, %v586_v21  ;;  %v715_v45 = vadd.f32 %v673_v43, %v587_v38  ;;  %v712_v48 = vadd.f32 %v668_v46, %v584_v40  ;;  %v713_v2 = vadd.f32 %v668_v46, %v585_v41 }
  0xe9   : > { %v727_v47 = vpack.c.bf16 %v701_v42, %v700_v39  ;;  %v409_v50 = vpop.f32.mrf.mxu2 }
  0xea   : > { %v734_v49 = vpack.c.bf16 %v715_v45, %v714_v44  ;;  %v733_v51 = vpack.c.bf16 %v713_v2, %v712_v48  ;;  %v588_v19 = vmul.f32 %v1501_v17, %v409_v50  ;;  %v458_v52 = vpop.f32.mrf.mxu3 }
  0xeb   : > { %743 = vst [vmem:[%s1512_s27 + $0x28] sm:$0xff] %v727_v47  ;;  %v392_v6 = vpop.f32.mrf.mxu0  ;;  %v589_v54 = vmul.f32 %v1501_v17, %v458_v52 }
  0xec   : > { %750 = vst [vmem:[%s1512_s27 + $0x60] sm:$0xff] %v734_v49  ;;  %v574_v55 = vmul.f32 %v1497_v11, %v392_v6  ;;  %v441_v56 = vpop.f32.mrf.mxu1  ;;  %v716_v57 = vadd.f32 %v678_v53, %v588_v19 }
  0xed   : > { %749 = vst [vmem:[%s1512_s27 + $0x58] sm:$0xff] %v733_v51  ;;  %v575_v58 = vmul.f32 %v1497_v11, %v441_v56  ;;  %v717_v59 = vadd.f32 %v678_v53, %v589_v54 }
  0xee   : > { %v702_v60 = vadd.f32 %v1517_v61, %v574_v55 }
  0xef   : > { %v703_v62 = vadd.f32 %v1517_v61, %v575_v58  ;;  %v735_v63 = vpack.c.bf16 %v717_v59, %v716_v57  ;;  %v683_v11 = vpop.permute.xlu0 %682  ;;  %v688_v27 = vpop.permute.xlu1 %687 }
  0xf1   : > { %v728_v0 = vpack.c.bf16 %v703_v62, %v702_v60  ;;  %751 = vst [vmem:[%s1512_s27 + $0x68] sm:$0xff] %v735_v63  ;;  %v412_v4 = vpop.f32.mrf.mxu2 }
  0xf2   : > { %v590_v17 = vmul.f32 %v1493_v9, %v412_v4  ;;  %v461_v5 = vpop.f32.mrf.mxu3 }
  0xf3   : > { %744 = vst [vmem:[%s1512_s27 + $0x30] sm:$0xff] %v728_v0  ;;  %v394_v8 = vpop.f32.mrf.mxu0  ;;  %v591_v12 = vmul.f32 %v1493_v9, %v461_v5 }
  0xf4   : > { %v576_v13 = vmul.f32 %v1495_v10, %v394_v8  ;;  %v443_v61 = vpop.f32.mrf.mxu1  ;;  %v718_v15 = vadd.f32 %v683_v11, %v590_v17 }
  0xf5   : > { %v577_v7 = vmul.f32 %v1495_v10, %v443_v61  ;;  %v719_v16 = vadd.f32 %v683_v11, %v591_v12 }
  0xf6   : > { %v704_v22 = vadd.f32 %v1510_v35, %v576_v13 }
  0xf7   : > { %v705_v23 = vadd.f32 %v1510_v35, %v577_v7  ;;  %v736_v24 = vpack.c.bf16 %v719_v16, %v718_v15 }
  0xf9   : > { %v729_v25 = vpack.c.bf16 %v705_v23, %v704_v22  ;;  %752 = vst [vmem:[%s1512_s27 + $0x70] sm:$0xff] %v736_v24  ;;  %v414_v9 = vpop.f32.mrf.mxu2 }
  0xfa   : > { %v592_v26 = vmul.f32 %v1508_v33, %v414_v9  ;;  %v463_v10 = vpop.f32.mrf.mxu3 }
  0xfb   : > { %745 = vst [vmem:[%s1512_s27 + $0x38] sm:$0xff] %v729_v25  ;;  %v593_v28 = vmul.f32 %v1508_v33, %v463_v10 }
  0xfc   : > { %v720_v35 = vadd.f32 %v688_v27, %v592_v26 }
  0xfd   : > { %v721_v29 = vadd.f32 %v688_v27, %v593_v28 }
  0xff   : > { %v737_v1 = vpack.c.bf16 %v721_v29, %v720_v35 }
 0x101   : > { %753 = vst [vmem:[%s1512_s27 + $0x78] sm:$0xff] %v737_v1 }
 0x102   : > { %1128 = shalt.err (!%p1125_p11)
}
 0x103   : > { %s1205_s26 = smov 128   ;;  %s1206_s7 = smov 512  }
 0x104   : > { %s1207_s27 = smov 8  }
 0x105   : > { %985 = dma.vmem_to_hbm [thread:$0]  (%p1298_p9), %s770_s25, 2048, %s772_s9, %s755_s30, %s1205_s26, %s1206_s7, %s1207_s27  }
 0x106 PF: > { %p996_p13 = scmp.ge.s32.totalorder %s1199_s22, 2  ;;  %s786_s29 = sand.u32 1, %s1171_s15  }
 0x107   : > { %s787_s11 = scalar_lea.sflag [#allocation4], %s786_s29 }
 0x108   : > { %p992_p0 = pnand %p996_p13, %p1304_p12 }
 0x10a   : > { %p993_p1 = pneg %p992_p0 }
 0x10c   : > { %1166 = dma.done.wait (%p993_p1), %s787_s11, 2048  }
 0x10d   : > { %1168 = vsyncadd (%p993_p1), %s787_s11, 4294965248  ;;  %s20_s22 = sadd.s32 1, %s1199_s22   ;;  %s1623_s17 = sld [smem:[#allocation8_spill]] }
 0x10e   : > { %p17_p2 = scmp.ge.s32.totalorder %s20_s22, 10   ;;  %s1624_s18 = sld [smem:[#allocation12_spill]] }
 0x10f   : > { %s1625_s5 = sld [smem:[#allocation9_spill]]  ;;  %s1628_s15 = smov %s1175_s16 }
 0x110   : > { %s1626_s20 = sld [smem:[#allocation10_spill]]  ;;  %s1632_s19 = smov %s1195_s21 }
 0x111   : > { %s1627_s12 = sld [smem:[#allocation11_spill]] }
 0x113   : > { %s1629_s16 = smov %s1623_s17  ;;  %19 = sbr.rel (!%p17_p2) target bundleno = 7 (0x7), region = 81 }
 0x114   : > { %s1630_s17 = smov %s1624_s18 }
 0x115   : > { %s1631_s18 = smov %s1625_s5 }
 0x117   : > { %s1633_s21 = smov %s1627_s12 }
 0x118   :  { %793 = vsyncpa [#allocation3], 1 }
 0x119   :  { %795 = vsyncpa [#allocation3 + $0x1], 1 }
 0x11a   :  { %796 = vsyncpa [#allocation4], 1 }
 0x11b   :  { %798 = vsyncpa [#allocation4 + $0x1], 1 }

</bundles_post_ra>
